<compile_context>
chip_gen: v7x
topology: tpu7x:2x2x1
jax: 0.10.0
libtpu: 0.0.40
codegen_flags: <defaults>
</compile_context>

<pallas_src>
import jax
import jax.numpy as jnp
from jax.experimental import pallas as pl
from jax.experimental.pallas import tpu as pltpu

# ---------------- configuration (small synthetic shapes) ----------------
BATCH = 8
LO_DIMS = (32, 32)          # two modalities
ADDED_DIM = sum(LO_DIMS)    # 64
MMHID = 32
GENOMIC = False             # gen_dim = 0
PAD = 128                   # lane-dense feature width


def _round_up(x, m):
    return (x + m - 1) // m * m


# ------------------------------ kernel ------------------------------
def fusion_kernel(x_ref, w_ref, b_ref, out_ref):
    """x_ref: (TM, 128); w_ref: (6, 128, 128); b_ref: (8, 128); out_ref: (TM, 128)."""
    x = x_ref[...]
    b = b_ref[...]          # single unmasked load of all biases

    def lin(inp, i):
        # lane-dense (TM,128) @ (128,128) on the MXU, f32 accumulate
        return jnp.dot(inp, w_ref[i],
                       preferred_element_type=jnp.float32) + b[i:i + 1, :]

    v = jax.nn.relu(lin(x, 0))            # block-diag values
    a = jax.nn.sigmoid(lin(x, 1))         # concatenated attention scores
    nk = jax.nn.relu(lin(a * v, 2))       # block-diag outputs == concat(o0, o1)
    h = jax.nn.relu(lin(nk, 3))           # encoder1 linear 1 (dropout = id)
    h = jax.nn.relu(lin(h, 4))            # encoder1 linear 2
    h = jax.nn.relu(lin(h, 5))            # encoder2 linear

    out_ref[...] = h.astype(out_ref.dtype)


# --------------------------- host wrapper ----------------------------
def pack_params(params):
    """Fuse per-modality weights (block-diag / concat) and pack into two
    lane-aligned slabs: weights (6,128,128) f32, biases (8,128) f32."""
    (wv0, bv0, wa0, ba0, wo0, bo0,
     wv1, bv1, wa1, ba1, wo1, bo1,
     w1, b1, w2, b2, w3, b3) = params
    d0, d1 = LO_DIMS

    def block_diag(a, b):
        top = jnp.concatenate([a, jnp.zeros((a.shape[0], b.shape[1]), a.dtype)], 1)
        bot = jnp.concatenate([jnp.zeros((b.shape[0], a.shape[1]), b.dtype), b], 1)
        return jnp.concatenate([top, bot], 0)

    wv = block_diag(wv0, wv1)                       # (64, 64)
    wa = jnp.concatenate([wa0, wa1], axis=1)        # (64, 64)
    wo = block_diag(wo0, wo1)                       # (64, 64)

    def pad_w(w):
        return jnp.zeros((PAD, PAD), jnp.float32).at[:w.shape[0], :w.shape[1]].set(w)

    weights = jnp.stack([pad_w(wv), pad_w(wa), pad_w(wo),
                         pad_w(w1), pad_w(w2), pad_w(w3)])   # (6, 128, 128)

    def pad_b(bb):
        bb = bb.reshape(-1)
        return jnp.zeros((PAD,), jnp.float32).at[:bb.shape[0]].set(bb)

    biases6 = jnp.stack([pad_b(jnp.concatenate([bv0, bv1], axis=1)),
                         pad_b(jnp.concatenate([ba0, ba1], axis=1)),
                         pad_b(jnp.concatenate([bo0, bo1], axis=1)),
                         pad_b(b1), pad_b(b2), pad_b(b3)])   # (6, 128)
    biases = jnp.zeros((8, PAD), jnp.float32).at[:6].set(biases6)
    return weights, biases


def fusion_forward(x_cat, weights, biases):
    """x_cat: (B, added_dim) concatenation of modality inputs."""
    b, din = x_cat.shape

    tm = 128 if b >= 128 else _round_up(b, 8)
    b_pad = _round_up(b, tm)
    x_p = jnp.zeros((b_pad, PAD), jnp.float32).at[:b, :din].set(x_cat)

    out = pl.pallas_call(
        fusion_kernel,
        out_shape=jax.ShapeDtypeStruct((b_pad, PAD), jnp.float32),
        grid=(b_pad // tm,),
        in_specs=[
            pl.BlockSpec((tm, PAD), lambda i: (i, 0)),
            pl.BlockSpec(weights.shape, lambda i: (0, 0, 0)),  # resident
            pl.BlockSpec(biases.shape, lambda i: (0, 0)),      # resident
        ],
        out_specs=pl.BlockSpec((tm, PAD), lambda i: (i, 0)),
        compiler_params=pltpu.CompilerParams(
            dimension_semantics=("parallel",)),
    )(x_p, weights, biases)

    return out[:b, :MMHID]


# ----------------------- params & pure-JAX reference -----------------------
def make_params(key):
    """Deterministic parameter init. Weights stored as (in, out)."""
    d0, d1 = LO_DIMS

    def lin(key, din, dout):
        kw, kb = jax.random.split(key)
        scale = 1.0 / jnp.sqrt(din)
        w = jax.random.uniform(kw, (din, dout), jnp.float32, -scale, scale)
        bias = jax.random.uniform(kb, (1, dout), jnp.float32, -scale, scale)
        return w, bias

    keys = jax.random.split(key, 9)
    wv0, bv0 = lin(keys[0], d0, d0)              # values[0]
    wa0, ba0 = lin(keys[1], ADDED_DIM, d0)       # attention_scores[0]
    wo0, bo0 = lin(keys[2], d0, d0)              # outputs[0]
    wv1, bv1 = lin(keys[3], d1, d1)              # values[1]
    wa1, ba1 = lin(keys[4], ADDED_DIM, d1)       # attention_scores[1]
    wo1, bo1 = lin(keys[5], d1, d1)              # outputs[1]
    w1, b1 = lin(keys[6], ADDED_DIM, MMHID * 2)  # encoder1 linear 1
    w2, b2 = lin(keys[7], MMHID * 2, MMHID)      # encoder1 linear 2
    w3, b3 = lin(keys[8], MMHID, MMHID)          # encoder2 linear
    return (wv0, bv0, wa0, ba0, wo0, bo0,
            wv1, bv1, wa1, ba1, wo1, bo1,
            w1, b1, w2, b2, w3, b3)


def fusion_reference(x_cat, params):
    d0, _ = LO_DIMS
    (wv0, bv0, wa0, ba0, wo0, bo0,
     wv1, bv1, wa1, ba1, wo1, bo1,
     w1, b1, w2, b2, w3, b3) = params
    x0, x1 = x_cat[:, :d0], x_cat[:, d0:]
    v0 = jax.nn.relu(x0 @ wv0 + bv0)
    a0 = jax.nn.sigmoid(x_cat @ wa0 + ba0)
    o0 = jax.nn.relu((a0 * v0) @ wo0 + bo0)
    v1 = jax.nn.relu(x1 @ wv1 + bv1)
    a1 = jax.nn.sigmoid(x_cat @ wa1 + ba1)
    o1 = jax.nn.relu((a1 * v1) @ wo1 + bo1)
    nk = jnp.concatenate([o0, o1], axis=1)
    h = jax.nn.relu(nk @ w1 + b1)
    h = jax.nn.relu(h @ w2 + b2)
    return jax.nn.relu(h @ w3 + b3)


if __name__ == "__main__":
    key = jax.random.PRNGKey(0)
    k_in0, k_in1, k_par = jax.random.split(key, 3)

    # Modality inputs (as the PyTorch forward would receive), then concat.
    inp0 = jax.random.normal(k_in0, (BATCH, LO_DIMS[0]), jnp.float32)
    inp1 = jax.random.normal(k_in1, (BATCH, LO_DIMS[1]), jnp.float32)
    x_cat = jnp.concatenate([inp0, inp1], axis=1)

    params = make_params(k_par)
    weights, biases = pack_params(params)

    out = fusion_forward(x_cat, weights, biases)
    out = jax.block_until_ready(out)

    ref = fusion_reference(x_cat, params)
    assert out.shape == (BATCH, MMHID)
    assert jnp.allclose(out, ref, atol=1e-5, rtol=1e-5)

    print("KERNEL_OK")
</pallas_src>

<mosaic_0001>
module attributes {stable_mosaic.version = 11 : i64} {
  func.func @fusion_kernel(%arg0: i32, %arg1: memref<8x128xf32, #tpu.memory_space<vmem>>, %arg2: memref<6x128x128xf32, #tpu.memory_space<vmem>>, %arg3: memref<8x128xf32, #tpu.memory_space<vmem>>, %arg4: memref<8x128xf32, #tpu.memory_space<vmem>>) attributes {dimension_semantics = [#tpu.dimension_semantics<parallel>], iteration_bounds = array<i64: 1>, scalar_prefetch = 0 : i64, scratch_operands = 0 : i64, tpu.core_type = #tpu.core_type<tc>, window_params = [{transform_indices = @transform_0, window_bounds = array<i64: 8, 128>}, {pipeline_mode = #tpu.pipeline_mode<synchronous>, transform_indices = @transform_1, window_bounds = array<i64: 6, 128, 128>}, {pipeline_mode = #tpu.pipeline_mode<synchronous>, transform_indices = @transform_2, window_bounds = array<i64: 8, 128>}, {transform_indices = @transform_3, window_bounds = array<i64: 8, 128>}]} {
    %c0 = arith.constant 0 : index
    %c0_0 = arith.constant 0 : index
    %0 = vector.load %arg1[%c0, %c0_0] : memref<8x128xf32, #tpu.memory_space<vmem>>, vector<8x128xf32>
    %c0_1 = arith.constant 0 : index
    %c0_2 = arith.constant 0 : index
    %1 = vector.load %arg3[%c0_1, %c0_2] : memref<8x128xf32, #tpu.memory_space<vmem>>, vector<8x128xf32>
    %c0_3 = arith.constant 0 : index
    %c0_4 = arith.constant 0 : index
    %c0_5 = arith.constant 0 : index
    %2 = vector.load %arg2[%c0_3, %c0_4, %c0_5] : memref<6x128x128xf32, #tpu.memory_space<vmem>>, vector<1x128x128xf32>
    %3 = vector.shape_cast %2 : vector<1x128x128xf32> to vector<128x128xf32>
    %cst = arith.constant dense<0.000000e+00> : vector<8x128xf32>
    %4 = tpu.matmul %0, %3, %cst {dimension_numbers = #tpu.dot_dimension_numbers<[1], [0], [0], [1], [0, 0, 1, 1], [], []>} : vector<8x128xf32>, vector<128x128xf32>, vector<8x128xf32> -> vector<8x128xf32>
    %5 = vector.extract_strided_slice %1 {offsets = [0, 0], sizes = [1, 128], strides = [1, 1]} : vector<8x128xf32> to vector<1x128xf32>
    %6 = vector.broadcast %5 : vector<1x128xf32> to vector<8x128xf32>
    %7 = arith.addf %4, %6 : vector<8x128xf32>
    %cst_6 = arith.constant 0.000000e+00 : f32
    %8 = vector.broadcast %cst_6 : f32 to vector<8x128xf32>
    %9 = arith.maximumf %7, %8 : vector<8x128xf32>
    %c1 = arith.constant 1 : index
    %c0_7 = arith.constant 0 : index
    %c0_8 = arith.constant 0 : index
    %10 = vector.load %arg2[%c1, %c0_7, %c0_8] : memref<6x128x128xf32, #tpu.memory_space<vmem>>, vector<1x128x128xf32>
    %11 = vector.shape_cast %10 : vector<1x128x128xf32> to vector<128x128xf32>
    %cst_9 = arith.constant dense<0.000000e+00> : vector<8x128xf32>
    %12 = tpu.matmul %0, %11, %cst_9 {dimension_numbers = #tpu.dot_dimension_numbers<[1], [0], [0], [1], [0, 0, 1, 1], [], []>} : vector<8x128xf32>, vector<128x128xf32>, vector<8x128xf32> -> vector<8x128xf32>
    %13 = vector.extract_strided_slice %1 {offsets = [1, 0], sizes = [1, 128], strides = [1, 1]} : vector<8x128xf32> to vector<1x128xf32>
    %14 = vector.broadcast %13 : vector<1x128xf32> to vector<8x128xf32>
    %15 = arith.addf %12, %14 : vector<8x128xf32>
    %16 = arith.negf %15 : vector<8x128xf32>
    %17 = math.exp %16 : vector<8x128xf32>
    %cst_10 = arith.constant 1.000000e+00 : f32
    %18 = vector.broadcast %cst_10 : f32 to vector<8x128xf32>
    %19 = arith.addf %18, %17 : vector<8x128xf32>
    %20 = arith.divf %18, %19 : vector<8x128xf32>
    %21 = arith.mulf %20, %9 : vector<8x128xf32>
    %c2 = arith.constant 2 : index
    %c0_11 = arith.constant 0 : index
    %c0_12 = arith.constant 0 : index
    %22 = vector.load %arg2[%c2, %c0_11, %c0_12] : memref<6x128x128xf32, #tpu.memory_space<vmem>>, vector<1x128x128xf32>
    %23 = vector.shape_cast %22 : vector<1x128x128xf32> to vector<128x128xf32>
    %cst_13 = arith.constant dense<0.000000e+00> : vector<8x128xf32>
    %24 = tpu.matmul %21, %23, %cst_13 {dimension_numbers = #tpu.dot_dimension_numbers<[1], [0], [0], [1], [0, 0, 1, 1], [], []>} : vector<8x128xf32>, vector<128x128xf32>, vector<8x128xf32> -> vector<8x128xf32>
    %25 = vector.extract_strided_slice %1 {offsets = [2, 0], sizes = [1, 128], strides = [1, 1]} : vector<8x128xf32> to vector<1x128xf32>
    %26 = vector.broadcast %25 : vector<1x128xf32> to vector<8x128xf32>
    %27 = arith.addf %24, %26 : vector<8x128xf32>
    %cst_14 = arith.constant 0.000000e+00 : f32
    %28 = vector.broadcast %cst_14 : f32 to vector<8x128xf32>
    %29 = arith.maximumf %27, %28 : vector<8x128xf32>
    %c3 = arith.constant 3 : index
    %c0_15 = arith.constant 0 : index
    %c0_16 = arith.constant 0 : index
    %30 = vector.load %arg2[%c3, %c0_15, %c0_16] : memref<6x128x128xf32, #tpu.memory_space<vmem>>, vector<1x128x128xf32>
    %31 = vector.shape_cast %30 : vector<1x128x128xf32> to vector<128x128xf32>
    %cst_17 = arith.constant dense<0.000000e+00> : vector<8x128xf32>
    %32 = tpu.matmul %29, %31, %cst_17 {dimension_numbers = #tpu.dot_dimension_numbers<[1], [0], [0], [1], [0, 0, 1, 1], [], []>} : vector<8x128xf32>, vector<128x128xf32>, vector<8x128xf32> -> vector<8x128xf32>
    %33 = vector.extract_strided_slice %1 {offsets = [3, 0], sizes = [1, 128], strides = [1, 1]} : vector<8x128xf32> to vector<1x128xf32>
    %34 = vector.broadcast %33 : vector<1x128xf32> to vector<8x128xf32>
    %35 = arith.addf %32, %34 : vector<8x128xf32>
    %cst_18 = arith.constant 0.000000e+00 : f32
    %36 = vector.broadcast %cst_18 : f32 to vector<8x128xf32>
    %37 = arith.maximumf %35, %36 : vector<8x128xf32>
    %c4 = arith.constant 4 : index
    %c0_19 = arith.constant 0 : index
    %c0_20 = arith.constant 0 : index
    %38 = vector.load %arg2[%c4, %c0_19, %c0_20] : memref<6x128x128xf32, #tpu.memory_space<vmem>>, vector<1x128x128xf32>
    %39 = vector.shape_cast %38 : vector<1x128x128xf32> to vector<128x128xf32>
    %cst_21 = arith.constant dense<0.000000e+00> : vector<8x128xf32>
    %40 = tpu.matmul %37, %39, %cst_21 {dimension_numbers = #tpu.dot_dimension_numbers<[1], [0], [0], [1], [0, 0, 1, 1], [], []>} : vector<8x128xf32>, vector<128x128xf32>, vector<8x128xf32> -> vector<8x128xf32>
    %41 = vector.extract_strided_slice %1 {offsets = [4, 0], sizes = [1, 128], strides = [1, 1]} : vector<8x128xf32> to vector<1x128xf32>
    %42 = vector.broadcast %41 : vector<1x128xf32> to vector<8x128xf32>
    %43 = arith.addf %40, %42 : vector<8x128xf32>
    %cst_22 = arith.constant 0.000000e+00 : f32
    %44 = vector.broadcast %cst_22 : f32 to vector<8x128xf32>
    %45 = arith.maximumf %43, %44 : vector<8x128xf32>
    %c5 = arith.constant 5 : index
    %c0_23 = arith.constant 0 : index
    %c0_24 = arith.constant 0 : index
    %46 = vector.load %arg2[%c5, %c0_23, %c0_24] : memref<6x128x128xf32, #tpu.memory_space<vmem>>, vector<1x128x128xf32>
    %47 = vector.shape_cast %46 : vector<1x128x128xf32> to vector<128x128xf32>
    %cst_25 = arith.constant dense<0.000000e+00> : vector<8x128xf32>
    %48 = tpu.matmul %45, %47, %cst_25 {dimension_numbers = #tpu.dot_dimension_numbers<[1], [0], [0], [1], [0, 0, 1, 1], [], []>} : vector<8x128xf32>, vector<128x128xf32>, vector<8x128xf32> -> vector<8x128xf32>
    %49 = vector.extract_strided_slice %1 {offsets = [5, 0], sizes = [1, 128], strides = [1, 1]} : vector<8x128xf32> to vector<1x128xf32>
    %50 = vector.broadcast %49 : vector<1x128xf32> to vector<8x128xf32>
    %51 = arith.addf %48, %50 : vector<8x128xf32>
    %cst_26 = arith.constant 0.000000e+00 : f32
    %52 = vector.broadcast %cst_26 : f32 to vector<8x128xf32>
    %53 = arith.maximumf %51, %52 : vector<8x128xf32>
    %c0_27 = arith.constant 0 : index
    %c0_28 = arith.constant 0 : index
    %54 = vector.load %arg4[%c0_27, %c0_28] : memref<8x128xf32, #tpu.memory_space<vmem>>, vector<8x128xf32>
    tpu.vector_store %arg4[%c0_27, %c0_28], %53 {strides = array<i32>} : memref<8x128xf32, #tpu.memory_space<vmem>>, vector<8x128xf32>,
    return
  }
  func.func @transform_0(%arg0: i32) -> (i32, i32) {
    %c0_i32 = arith.constant 0 : i32
    %c0_i32_0 = arith.constant 0 : i32
    return %arg0, %c0_i32 : i32, i32
  }
  func.func @transform_1(%arg0: i32) -> (i32, i32, i32) {
    %c0_i32 = arith.constant 0 : i32
    %c0_i32_0 = arith.constant 0 : i32
    %c0_i32_1 = arith.constant 0 : i32
    %c0_i32_2 = arith.constant 0 : i32
    return %c0_i32, %c0_i32_0, %c0_i32_1 : i32, i32, i32
  }
  func.func @transform_2(%arg0: i32) -> (i32, i32) {
    %c0_i32 = arith.constant 0 : i32
    %c0_i32_0 = arith.constant 0 : i32
    %c0_i32_1 = arith.constant 0 : i32
    return %c0_i32, %c0_i32_0 : i32, i32
  }
  func.func @transform_3(%arg0: i32) -> (i32, i32) {
    %c0_i32 = arith.constant 0 : i32
    %c0_i32_0 = arith.constant 0 : i32
    return %arg0, %c0_i32 : i32, i32
  }
}

</mosaic_0001>

<bundles_post_ra>
// kernel: tpu_custom_call.1
= control target key start
LH: loop header
LB: loop body
LE: loop exit
PB: predicated region body
PF: predicated region fallthrough
CT: control target
= control target key end

     0   :  { %8 = vsyncpa [#allocation3], 0  ;;  %s1345_s0 = inlined_call_operand.hbm [shape: f32[8,128], index: 0, kind: input, shape index: {}]   ;;  %s1346_s1 = inlined_call_operand.hbm [shape: f32[6,128,128], index: 1, kind: input, shape index: {}]   ;;  %s1347_s2 = inlined_call_operand.hbm [shape: f32[8,128], index: 2, kind: input, shape index: {}]   ;;  %s1348_s3 = inlined_call_operand.hbm [shape: f32[8,128], index: 3, kind: output, shape index: {}]  }
   0x1   :  { %9 = vsyncpa [#allocation6], 0 }
   0x2   :  { %10 = vsyncpa [#allocation4], 0  ;;  %s1192_s12 = smov [#allocation5]   ;;  %s1098_s16 = scalar_lea.hbm %s1346_s1, 12288 }
   0x3   :  { %s26_s13 = sshll.u32 %s1192_s12, 4  ;;  %p1099_p0 = scmp.ne.s32.totalorder %s1346_s1, %s1098_s16  ;;  %s27_s13 = int_to_ptr.vmem [resolvable:$true] %s26_s13 }
   0x4   :  { %p1102_p1 = scmp.lt.u32.totalorder %s1098_s16, %s1346_s1 }
   0x6   :  { %p1104_p2 = pnand %p1102_p1, %p1099_p0 }
   0x8   :  { %1107 = shalt.err (!%p1104_p2)
}
   0x9   :  { %s1108_s21 = scalar_lea.vmem %s27_s13, 12288  ;;  %p1113_p4 = scmp.lt.s32.totalorder %s27_s13, %s27_s13 }
   0xa   :  { %p1109_p3 = scmp.ne.s32.totalorder %s27_s13, %s1108_s21  ;;  %p1114_p5 = scmp.lt.s32.totalorder %s1108_s21, %s1108_s21 }
   0xc   :  { %p1115_p6 = por %p1114_p5, %p1113_p4 }
   0xe   :  { %p1116_p7 = pnand %p1115_p6, %p1109_p3 }
  0x10   :  { %1119 = shalt.err (!%p1116_p7)
}
  0x11   :  { %s1193_s22 = smov 128   ;;  %s1194_s23 = smov 8  }
  0x12   :  { %32 = dma.hbm_to_vmem [thread:$0]  %s1346_s1, 12288, %s27_s13, [#allocation6], %s1193_s22, %s1193_s22, %s1194_s23  }
  0x13   :  { %s1195_s26 = smov [#allocation2]   ;;  %s1196_s28 = smov [#allocation7]  }
  0x14   :  { %s17_s27 = sshll.u32 %s1195_s26, 4  ;;  %s39_s29 = sshll.u32 %s1196_s28, 4  ;;  %s18_s27 = int_to_ptr.vmem [resolvable:$true] %s17_s27  ;;  %s40_s29 = int_to_ptr.vmem [resolvable:$true] %s39_s29 }
  0x15   :  { %s1120_s5 = scalar_lea.hbm %s1345_s0, 128 }
  0x16   :  { %p1121_p8 = scmp.ne.s32.totalorder %s1345_s0, %s1120_s5  ;;  %p1124_p9 = scmp.lt.u32.totalorder %s1120_s5, %s1345_s0 }
  0x18   :  { %p1126_p10 = pnand %p1124_p9, %p1121_p8 }
  0x1a   :  { %1129 = shalt.err (!%p1126_p10)
}
  0x1b   :  { %s1130_s1 = scalar_lea.vmem %s18_s27, 128  ;;  %p1135_p12 = scmp.lt.s32.totalorder %s18_s27, %s18_s27 }
  0x1c   :  { %p1131_p11 = scmp.ne.s32.totalorder %s18_s27, %s1130_s1  ;;  %p1136_p13 = scmp.lt.s32.totalorder %s1130_s1, %s1130_s1 }
  0x1e   :  { %p1137_p0 = por %p1136_p13, %p1135_p12 }
  0x20   :  { %p1138_p1 = pnand %p1137_p0, %p1131_p11 }
  0x22   :  { %1141 = shalt.err (!%p1138_p1)
}
  0x23   :  { %20 = dma.hbm_to_vmem [thread:$0]  %s1345_s0, 128, %s18_s27, [#allocation3]  }
  0x24   :  { %s1142_s14 = scalar_lea.hbm %s1347_s2, 128 }
  0x25   :  { %p1143_p2 = scmp.ne.s32.totalorder %s1347_s2, %s1142_s14  ;;  %p1146_p3 = scmp.lt.u32.totalorder %s1142_s14, %s1347_s2 }
  0x27   :  { %p1148_p4 = pnand %p1146_p3, %p1143_p2 }
  0x29   :  { %1151 = shalt.err (!%p1148_p4)
}
  0x2a   :  { %s1152_s19 = scalar_lea.vmem %s40_s29, 128  ;;  %p1157_p6 = scmp.lt.s32.totalorder %s40_s29, %s40_s29 }
  0x2b   :  { %p1153_p5 = scmp.ne.s32.totalorder %s40_s29, %s1152_s19  ;;  %p1158_p7 = scmp.lt.s32.totalorder %s1152_s19, %s1152_s19 }
  0x2d   :  { %p1159_p8 = por %p1158_p7, %p1157_p6 }
  0x2f   :  { %p1160_p9 = pnand %p1159_p8, %p1153_p5 }
  0x31   :  { %1163 = shalt.err (!%p1160_p9)
}
  0x32   :  { %42 = dma.hbm_to_vmem [thread:$0]  %s1347_s2, 128, %s40_s29, [#allocation6]  }
  0x33   :  { %1186 = dma.done.wait [#allocation3], 128  }
  0x34   :  { %1187 = vsyncadd [#allocation3], 4294967168 }
  0x35   :  { %1188 = dma.done.wait [#allocation6], 12416  }
  0x36   :  { %1189 = vsyncadd [#allocation6], 4294954880  ;;  %v1197_v0 = vmov 0.0|0.0   ;;  %vm1198_vm0 = vmmov 0   ;;  %v1199_v1 = vmov 0.0   ;;  %v146_v2 = vld [vmem:[#allocation5 + $0x80] sm:$0xff] }
  0x37   :  { %965 = vmatprep.subr.bf16.mxu1 %v1197_v0  ;;  %941 = vmatprep.subr.bf16.mxu0 %v1197_v0  ;;  %v147_v3 = vld [vmem:[#allocation5 + $0x88] sm:$0xff]  ;;  %v148_v4 = vld [vmem:[#allocation5 + $0x90] sm:$0xff]  ;;  %v149_v6 = vld [vmem:[#allocation5 + $0x98] sm:$0xff]  ;;  %s1200_s2 = smov [#allocation8]  }
  0x38   :  { %798 = vmatprep.mubr.msk.f32.mxu1 %vm1198_vm0, %v1199_v1  ;;  %763 = vmatprep.mubr.msk.f32.mxu0 %vm1198_vm0, %v1199_v1  ;;  %v966_v5 = vpack.c.bf16 %v147_v3, %v146_v2  ;;  %v969_v7 = vpack.c.bf16 %v149_v6, %v148_v4  ;;  %v150_v8 = vld [vmem:[#allocation5 + $0xa0] sm:$0xff]  ;;  %v151_v9 = vld [vmem:[#allocation5 + $0xa8] sm:$0xff]  ;;  %v56_v13 = vld [vmem:[#allocation5 + $0x10] sm:$0xff]  ;;  %s618_s21 = sshll.u32 %s1200_s2, 4  ;;  %s619_s21 = int_to_ptr.vmem [resolvable:$true] %s618_s21 }
  0x39   :  { %v54_v10 = vld [vmem:[#allocation5] sm:$0xff]  ;;  %v55_v11 = vld [vmem:[#allocation5 + $0x8] sm:$0xff]  ;;  %v57_v14 = vld [vmem:[#allocation5 + $0x18] sm:$0xff]  ;;  %v972_v15 = vpack.c.bf16 %v151_v9, %v150_v8  ;;  %s1164_s22 = scalar_lea.vmem %s619_s21, 128  ;;  %p1169_p11 = scmp.lt.s32.totalorder %s619_s21, %s619_s21 }
  0x3a   :  { %967 = vmatpush3.bf16.msra.mxu1 %v966_v5  ;;  %v942_v12 = vpack.c.bf16 %v55_v11, %v54_v10  ;;  %v152_v16 = vld [vmem:[#allocation5 + $0xb0] sm:$0xff]  ;;  %v945_v17 = vpack.c.bf16 %v57_v14, %v56_v13  ;;  %v153_v18 = vld [vmem:[#allocation5 + $0xb8] sm:$0xff]  ;;  %v58_v19 = vld [vmem:[#allocation5 + $0x20] sm:$0xff]  ;;  %p1165_p10 = scmp.ne.s32.totalorder %s619_s21, %s1164_s22  ;;  %p1170_p12 = scmp.lt.s32.totalorder %s1164_s22, %s1164_s22 }
  0x3b   :  { %968 = vmatprep.subr.bf16.mxu1 %v1197_v0  ;;  %v59_v20 = vld [vmem:[#allocation5 + $0x28] sm:$0xff]  ;;  %v975_v21 = vpack.c.bf16 %v153_v18, %v152_v16  ;;  %v154_v22 = vld [vmem:[#allocation5 + $0xc0] sm:$0xff]  ;;  %v60_v25 = vld [vmem:[#allocation5 + $0x30] sm:$0xff] }
  0x3c   :  { %943 = vmatpush3.bf16.msra.mxu0 %v942_v12  ;;  %v948_v23 = vpack.c.bf16 %v59_v20, %v58_v19  ;;  %v155_v24 = vld [vmem:[#allocation5 + $0xc8] sm:$0xff]  ;;  %v61_v26 = vld [vmem:[#allocation5 + $0x38] sm:$0xff]  ;;  %v156_v28 = vld [vmem:[#allocation5 + $0xd0] sm:$0xff]  ;;  %p1171_p13 = por %p1170_p12, %p1169_p11 }
  0x3d   :  { %944 = vmatprep.subr.bf16.mxu0 %v1197_v0  ;;  %v978_v27 = vpack.c.bf16 %v155_v24, %v154_v22  ;;  %v951_v29 = vpack.c.bf16 %v61_v26, %v60_v25  ;;  %v157_v30 = vld [vmem:[#allocation5 + $0xd8] sm:$0xff]  ;;  %v62_v31 = vld [vmem:[#allocation5 + $0x40] sm:$0xff]  ;;  %v63_v32 = vld [vmem:[#allocation5 + $0x48] sm:$0xff] }
  0x3e   :  { %970 = vmatpush3.bf16.msra.mxu1 %v969_v7  ;;  %v981_v33 = vpack.c.bf16 %v157_v30, %v156_v28  ;;  %v158_v34 = vld [vmem:[#allocation5 + $0xe0] sm:$0xff]  ;;  %v954_v35 = vpack.c.bf16 %v63_v32, %v62_v31  ;;  %v159_v36 = vld [vmem:[#allocation5 + $0xe8] sm:$0xff]  ;;  %v64_v37 = vld [vmem:[#allocation5 + $0x50] sm:$0xff]  ;;  %p1172_p0 = pnand %p1171_p13, %p1165_p10 }
  0x3f   :  { %971 = vmatprep.subr.bf16.mxu1 %v1197_v0  ;;  %v65_v38 = vld [vmem:[#allocation5 + $0x58] sm:$0xff]  ;;  %v984_v39 = vpack.c.bf16 %v159_v36, %v158_v34  ;;  %v160_v40 = vld [vmem:[#allocation5 + $0xf0] sm:$0xff]  ;;  %v66_v43 = vld [vmem:[#allocation5 + $0x60] sm:$0xff]  ;;  %v70_v34 = vlaneseq }
  0x40   :  { %946 = vmatpush3.bf16.msra.mxu0 %v945_v17  ;;  %v957_v41 = vpack.c.bf16 %v65_v38, %v64_v37  ;;  %v161_v42 = vld [vmem:[#allocation5 + $0xf8] sm:$0xff]  ;;  %v67_v44 = vld [vmem:[#allocation5 + $0x68] sm:$0xff]  ;;  %v68_v47 = vld [vmem:[#allocation5 + $0x70] sm:$0xff] }
  0x41   :  { %947 = vmatprep.subr.bf16.mxu0 %v1197_v0  ;;  %v987_v45 = vpack.c.bf16 %v161_v42, %v160_v40  ;;  %v960_v46 = vpack.c.bf16 %v67_v44, %v66_v43  ;;  %v69_v48 = vld [vmem:[#allocation5 + $0x78] sm:$0xff]  ;;  %v244_v51 = vld [vmem:[#allocation5 + $0x100] sm:$0xff]  ;;  %v245_v52 = vld [vmem:[#allocation5 + $0x108] sm:$0xff] }
  0x42   :  { %973 = vmatpush3.bf16.msra.mxu1 %v972_v15  ;;  %v52_v49 = vld [vmem:[#allocation2] sm:$0xff]  ;;  %v963_v50 = vpack.c.bf16 %v69_v48, %v68_v47  ;;  %v990_v53 = vpack.c.bf16 %v245_v52, %v244_v51  ;;  %v246_v54 = vld [vmem:[#allocation5 + $0x110] sm:$0xff]  ;;  %v248_v57 = vld [vmem:[#allocation5 + $0x120] sm:$0xff] }
  0x43   :  { %974 = vmatprep.subr.bf16.mxu1 %v1197_v0  ;;  %v247_v55 = vld [vmem:[#allocation5 + $0x118] sm:$0xff]  ;;  %v249_v58 = vld [vmem:[#allocation5 + $0x128] sm:$0xff]  ;;  %v250_v60 = vld [vmem:[#allocation5 + $0x130] sm:$0xff] }
  0x44   :  { %949 = vmatpush3.bf16.msra.mxu0 %v948_v23  ;;  %v993_v56 = vpack.c.bf16 %v247_v55, %v246_v54  ;;  %v996_v59 = vpack.c.bf16 %v249_v58, %v248_v57  ;;  %v251_v61 = vld [vmem:[#allocation5 + $0x138] sm:$0xff]  ;;  %v252_v63 = vld [vmem:[#allocation5 + $0x140] sm:$0xff]  ;;  %v253_v2 = vld [vmem:[#allocation5 + $0x148] sm:$0xff] }
  0x45   :  { %950 = vmatprep.subr.bf16.mxu0 %v1197_v0  ;;  %v999_v62 = vpack.c.bf16 %v251_v61, %v250_v60  ;;  %v1002_v3 = vpack.c.bf16 %v253_v2, %v252_v63  ;;  %v254_v4 = vld [vmem:[#allocation5 + $0x150] sm:$0xff]  ;;  %v255_v5 = vld [vmem:[#allocation5 + $0x158] sm:$0xff]  ;;  %v256_v7 = vld [vmem:[#allocation5 + $0x160] sm:$0xff] }
  0x46   :  { %976 = vmatpush3.bf16.msra.mxu1 %v975_v21  ;;  %v1005_v6 = vpack.c.bf16 %v255_v5, %v254_v4  ;;  %v257_v8 = vld [vmem:[#allocation5 + $0x168] sm:$0xff]  ;;  %v258_v10 = vld [vmem:[#allocation5 + $0x170] sm:$0xff]  ;;  %v259_v11 = vld [vmem:[#allocation5 + $0x178] sm:$0xff] }
  0x47   :  { %977 = vmatprep.subr.bf16.mxu1 %v1197_v0  ;;  %v1008_v9 = vpack.c.bf16 %v257_v8, %v256_v7  ;;  %v1011_v12 = vpack.c.bf16 %v259_v11, %v258_v10  ;;  %v336_v13 = vld [vmem:[#allocation5 + $0x180] sm:$0xff]  ;;  %v337_v14 = vld [vmem:[#allocation5 + $0x188] sm:$0xff]  ;;  %v338_v15 = vld [vmem:[#allocation5 + $0x190] sm:$0xff] }
  0x48   :  { %952 = vmatpush3.bf16.msra.mxu0 %v951_v29  ;;  %v1014_v16 = vpack.c.bf16 %v337_v14, %v336_v13  ;;  %v339_v17 = vld [vmem:[#allocation5 + $0x198] sm:$0xff]  ;;  %v340_v19 = vld [vmem:[#allocation5 + $0x1a0] sm:$0xff]  ;;  %v341_v20 = vld [vmem:[#allocation5 + $0x1a8] sm:$0xff] }
  0x49   :  { %953 = vmatprep.subr.bf16.mxu0 %v1197_v0  ;;  %v1017_v18 = vpack.c.bf16 %v339_v17, %v338_v15  ;;  %v1020_v21 = vpack.c.bf16 %v341_v20, %v340_v19  ;;  %v342_v22 = vld [vmem:[#allocation5 + $0x1b0] sm:$0xff]  ;;  %v343_v23 = vld [vmem:[#allocation5 + $0x1b8] sm:$0xff]  ;;  %v344_v25 = vld [vmem:[#allocation5 + $0x1c0] sm:$0xff] }
  0x4a   :  { %979 = vmatpush3.bf16.msra.mxu1 %v978_v27  ;;  %v1023_v24 = vpack.c.bf16 %v343_v23, %v342_v22  ;;  %v345_v26 = vld [vmem:[#allocation5 + $0x1c8] sm:$0xff]  ;;  %v346_v28 = vld [vmem:[#allocation5 + $0x1d0] sm:$0xff]  ;;  %v347_v29 = vld [vmem:[#allocation5 + $0x1d8] sm:$0xff] }
  0x4b   :  { %980 = vmatprep.subr.bf16.mxu1 %v1197_v0  ;;  %v1026_v27 = vpack.c.bf16 %v345_v26, %v344_v25  ;;  %v1029_v30 = vpack.c.bf16 %v347_v29, %v346_v28  ;;  %v348_v31 = vld [vmem:[#allocation5 + $0x1e0] sm:$0xff]  ;;  %v349_v32 = vld [vmem:[#allocation5 + $0x1e8] sm:$0xff]  ;;  %v351_v54 = vld [vmem:[#allocation5 + $0x1f8] sm:$0xff] }
  0x4c   :  { %955 = vmatpush3.bf16.msra.mxu0 %v954_v35  ;;  %v1298_v35 = vshrl.u32 %v70_v34, 7  ;;  %v1301_v37 = vld [vmem:[#allocation7] sm:$0xff]  ;;  %v429_v57 = vld [vmem:[#allocation5 + $0x208] sm:$0xff]  ;;  %v430_v58 = vld [vmem:[#allocation5 + $0x210] sm:$0xff] }
  0x4d   :  { %956 = vmatprep.subr.bf16.mxu0 %v1197_v0  ;;  %v431_v60 = vld [vmem:[#allocation5 + $0x218] sm:$0xff]  ;;  %v433_v63 = vld [vmem:[#allocation5 + $0x228] sm:$0xff]  ;;  %v522_v26 = vld [vmem:[#allocation5 + $0x290] sm:$0xff] }
  0x4e   :  { %982 = vmatpush3.bf16.msra.mxu1 %v981_v33  ;;  %v1032_v33 = vpack.c.bf16 %v349_v32, %v348_v31  ;;  %v164_v36 = vsub.s32 1, %v1298_v35  ;;  %v1041_v61 = vpack.c.bf16 %v431_v60, %v430_v58  ;;  %v435_v4 = vld [vmem:[#allocation5 + $0x238] sm:$0xff]  ;;  %v437_v7 = vld [vmem:[#allocation5 + $0x248] sm:$0xff]  ;;  %v262_v15 = vsub.s32 2, %v1298_v35 }
  0x4f   :  { %983 = vmatprep.subr.bf16.mxu1 %v1197_v0  ;;  %v439_v10 = vld [vmem:[#allocation5 + $0x258] sm:$0xff]  ;;  %v441_v13 = vld [vmem:[#allocation5 + $0x268] sm:$0xff]  ;;  %v538_v60 = vsub.s32 5, %v1298_v35 }
  0x50   :  { %958 = vmatpush3.bf16.msra.mxu0 %v957_v41  ;;  %v165_v38 = vrot.slane %v1301_v37, %v164_v36  ;;  %v443_v22 = vld [vmem:[#allocation5 + $0x278] sm:$0xff]  ;;  %v521_v25 = vld [vmem:[#allocation5 + $0x288] sm:$0xff]  ;;  %v528_v36 = vld [vmem:[#allocation5 + $0x2c0] sm:$0xff] }
  0x51   :  { %959 = vmatprep.subr.bf16.mxu0 %v1197_v0  ;;  %v523_v28 = vld [vmem:[#allocation5 + $0x298] sm:$0xff]  ;;  %v525_v31 = vld [vmem:[#allocation5 + $0x2a8] sm:$0xff] }
  0x52   :  { %985 = vmatpush3.bf16.msra.mxu1 %v984_v39  ;;  %v1065_v29 = vpack.c.bf16 %v523_v28, %v522_v26 }
  0x53   :  { %986 = vmatprep.subr.bf16.mxu1 %v1197_v0 }
  0x54   :  { %961 = vmatpush3.bf16.msra.mxu0 %v960_v46 }
  0x55   :  { %962 = vmatprep.subr.bf16.mxu0 %v1197_v0 }
  0x56   :  { %988 = vmatpush3.bf16.msra.mxu1 %v987_v45  ;;  %v72_v45 = vsub.s32 0, %v1298_v35 }
  0x57   :  { %1013 = vmatprep.subr.bf16.mxu1 %v1197_v0 }
  0x58   :  { %964 = vmatpush3.bf16.msra.mxu0 %v963_v50  ;;  %v73_v48 = vrot.slane %v1301_v37, %v72_v45 }
  0x59   :  { %799 = vmatmul.mubr.f32.vlgmr.msra.gmra.mrb[0].mxu1 %v52_v49  ;;  %989 = vmatprep.subr.bf16.mxu0 %v1197_v0 }
  0x5a   :  { %868 = vmatprep.mubr.msk.f32.mxu1 %vm1198_vm0, %v1199_v1  ;;  %1015 = vmatpush3.bf16.msra.mxu1 %v1014_v16  ;;  %v263_v16 = vrot.slane %v1301_v37, %v262_v15 }
  0x5b   :  { %764 = vmatmul.mubr.f32.vlgmr.msra.gmra.mrb[0].mxu0 %v52_v49  ;;  %1016 = vmatprep.subr.bf16.mxu1 %v1197_v0 }
  0x5c   :  { %833 = vmatprep.mubr.msk.f32.mxu0 %vm1198_vm0, %v1199_v1  ;;  %991 = vmatpush3.bf16.msra.mxu0 %v990_v53  ;;  %v350_v53 = vld [vmem:[#allocation5 + $0x1f0] sm:$0xff] }
  0x5d   :  { %992 = vmatprep.subr.bf16.mxu0 %v1197_v0  ;;  %v1035_v55 = vpack.c.bf16 %v351_v54, %v350_v53  ;;  %v535_v53 = vld [vmem:[#allocation5 + $0x2f8] sm:$0xff] }
  0x5e   :  { %1018 = vmatpush3.bf16.msra.mxu1 %v1017_v18 }
  0x5f   :  { %1019 = vmatprep.subr.bf16.mxu1 %v1197_v0 }
  0x60   :  { %994 = vmatpush3.bf16.msra.mxu0 %v993_v56  ;;  %v428_v56 = vld [vmem:[#allocation5 + $0x200] sm:$0xff] }
  0x61   :  { %995 = vmatprep.subr.bf16.mxu0 %v1197_v0 }
  0x62   :  { %1021 = vmatpush3.bf16.msra.mxu1 %v1020_v21  ;;  %v442_v21 = vld [vmem:[#allocation5 + $0x270] sm:$0xff] }
  0x63   :  { %1022 = vmatprep.subr.bf16.mxu1 %v1197_v0  ;;  %v1059_v23 = vpack.c.bf16 %v443_v22, %v442_v21 }
  0x64   :  { %997 = vmatpush3.bf16.msra.mxu0 %v996_v59  ;;  %v1038_v59 = vpack.c.bf16 %v429_v57, %v428_v56 }
  0x65   :  { %998 = vmatprep.subr.bf16.mxu0 %v1197_v0 }
  0x66   :  { %1024 = vmatpush3.bf16.msra.mxu1 %v1023_v24  ;;  %v520_v24 = vld [vmem:[#allocation5 + $0x280] sm:$0xff] }
  0x67   :  { %1025 = vmatprep.subr.bf16.mxu1 %v1197_v0 }
  0x68   :  { %1000 = vmatpush3.bf16.msra.mxu0 %v999_v62  ;;  %v432_v62 = vld [vmem:[#allocation5 + $0x220] sm:$0xff] }
  0x69   :  { %1001 = vmatprep.subr.bf16.mxu0 %v1197_v0  ;;  %v1044_v2 = vpack.c.bf16 %v433_v63, %v432_v62 }
  0x6a   :  { %1027 = vmatpush3.bf16.msra.mxu1 %v1026_v27  ;;  %v1062_v27 = vpack.c.bf16 %v521_v25, %v520_v24 }
  0x6b   :  { %1028 = vmatprep.subr.bf16.mxu1 %v1197_v0 }
  0x6c   :  { %1003 = vmatpush3.bf16.msra.mxu0 %v1002_v3  ;;  %v434_v3 = vld [vmem:[#allocation5 + $0x230] sm:$0xff] }
  0x6d   :  { %1004 = vmatprep.subr.bf16.mxu0 %v1197_v0  ;;  %v1047_v5 = vpack.c.bf16 %v435_v4, %v434_v3 }
  0x6e   :  { %1030 = vmatpush3.bf16.msra.mxu1 %v1029_v30  ;;  %v524_v30 = vld [vmem:[#allocation5 + $0x2a0] sm:$0xff] }
  0x6f   :  { %1031 = vmatprep.subr.bf16.mxu1 %v1197_v0  ;;  %v1068_v32 = vpack.c.bf16 %v525_v31, %v524_v30 }
  0x70   :  { %1006 = vmatpush3.bf16.msra.mxu0 %v1005_v6  ;;  %v436_v6 = vld [vmem:[#allocation5 + $0x240] sm:$0xff] }
  0x71   :  { %1007 = vmatprep.subr.bf16.mxu0 %v1197_v0  ;;  %v1050_v8 = vpack.c.bf16 %v437_v7, %v436_v6 }
  0x72   :  { %1033 = vmatpush3.bf16.msra.mxu1 %v1032_v33  ;;  %v527_v33 = vld [vmem:[#allocation5 + $0x2b8] sm:$0xff] }
  0x73   :  { %1034 = vmatprep.subr.bf16.mxu1 %v1197_v0 }
  0x74   :  { %1009 = vmatpush3.bf16.msra.mxu0 %v1008_v9  ;;  %v438_v9 = vld [vmem:[#allocation5 + $0x250] sm:$0xff] }
  0x75   :  { %1010 = vmatprep.subr.bf16.mxu0 %v1197_v0  ;;  %v1053_v11 = vpack.c.bf16 %v439_v10, %v438_v9 }
  0x76   :  { %1036 = vmatpush3.bf16.msra.mxu1 %v1035_v55  ;;  %v446_v55 = vsub.s32 4, %v1298_v35 }
  0x77   :  { %1061 = vmatprep.subr.bf16.mxu1 %v1197_v0 }
  0x78   :  { %1012 = vmatpush3.bf16.msra.mxu0 %v1011_v12  ;;  %v440_v12 = vld [vmem:[#allocation5 + $0x260] sm:$0xff]  ;;  %v447_v56 = vrot.slane %v1301_v37, %v446_v55 }
  0x79   :  { %1037 = vmatprep.subr.bf16.mxu0 %v1197_v0  ;;  %v1056_v14 = vpack.c.bf16 %v441_v13, %v440_v12 }
 0x12c   :  { %v232_v39 = vpop.f32.mrb[0].mxu1 }
 0x12d   :  { %v233_v40 = vadd.f32 %v232_v39, %v165_v38  ;;  %v800_v41 = vpop.f32.mrb[1].mxu1  ;;  %v529_v38 = vld [vmem:[#allocation5 + $0x2c8] sm:$0xff] }
 0x12e   :  { %v140_v43 = vpop.f32.mrb[0].mxu0  ;;  %v1074_v39 = vpack.c.bf16 %v529_v38, %v528_v36  ;;  %v531_v41 = vld [vmem:[#allocation5 + $0x2d8] sm:$0xff] }
 0x12f   :  { %v628_v42 = vmul.f32 -1.442695, %v233_v40  ;;  %v765_v44 = vpop.f32.mrb[1].mxu0  ;;  %v141_v49 = vadd.f32 %v140_v43, %v73_v48  ;;  %v530_v40 = vld [vmem:[#allocation5 + $0x2d0] sm:$0xff]  ;;  %v532_v43 = vld [vmem:[#allocation5 + $0x2e0] sm:$0xff] }
 0x130   :  { %v533_v44 = vld [vmem:[#allocation5 + $0x2e8] sm:$0xff] }
 0x131   :  { %1094 = vpow2.f32 %v628_v42  ;;  %v144_v50 = vmax.f32 %v141_v49, 0.0  ;;  %v1077_v42 = vpack.c.bf16 %v531_v41, %v530_v40  ;;  %v1080_v45 = vpack.c.bf16 %v533_v44, %v532_v43 }
 0x13b   :  { %v1095_v46 = vpop.eup %1094 }
 0x13c   :  { %v239_v47 = vadd.f32 1.0, %v1095_v46  ;;  %v354_v46 = vsub.s32 3, %v1298_v35 }
 0x13e   :  { %1096 = vrcp.f32 %v239_v47  ;;  %v355_v47 = vrot.slane %v1301_v37, %v354_v46 }
 0x148   :  { %v1097_v51 = vpop.eup %1096 }
 0x149   :  { %v242_v52 = vmul.f32 %v1097_v51, %v144_v50 }
 0x14b   :  { %834 = vmatmul.mubr.f32.vlgmr.msra.gmra.mrb[2].mxu0 %v242_v52  ;;  %v534_v52 = vld [vmem:[#allocation5 + $0x2f0] sm:$0xff] }
 0x14c   :  { %903 = vmatprep.mubr.msk.f32.mxu0 %vm1198_vm0, %v1199_v1  ;;  %1039 = vmatpush3.bf16.msra.mxu0 %v1038_v59  ;;  %v1083_v54 = vpack.c.bf16 %v535_v53, %v534_v52 }
 0x14d   :  { %1040 = vmatprep.subr.bf16.mxu0 %v1197_v0 }
 0x150   :  { %1042 = vmatpush3.bf16.msra.mxu0 %v1041_v61  ;;  %v539_v61 = vrot.slane %v1301_v37, %v538_v60 }
 0x151   :  { %1043 = vmatprep.subr.bf16.mxu0 %v1197_v0 }
 0x154   :  { %1045 = vmatpush3.bf16.msra.mxu0 %v1044_v2 }
 0x155   :  { %1046 = vmatprep.subr.bf16.mxu0 %v1197_v0 }
 0x158   :  { %1048 = vmatpush3.bf16.msra.mxu0 %v1047_v5 }
 0x159   :  { %1049 = vmatprep.subr.bf16.mxu0 %v1197_v0 }
 0x15c   :  { %1051 = vmatpush3.bf16.msra.mxu0 %v1050_v8 }
 0x15d   :  { %1052 = vmatprep.subr.bf16.mxu0 %v1197_v0 }
 0x160   :  { %1054 = vmatpush3.bf16.msra.mxu0 %v1053_v11 }
 0x161   :  { %1055 = vmatprep.subr.bf16.mxu0 %v1197_v0 }
 0x164   :  { %1057 = vmatpush3.bf16.msra.mxu0 %v1056_v14 }
 0x165   :  { %1058 = vmatprep.subr.bf16.mxu0 %v1197_v0 }
 0x168   :  { %1060 = vmatpush3.bf16.msra.mxu0 %v1059_v23 }
 0x21e   :  { %v330_v17 = vpop.f32.mrb[2].mxu0 }
 0x21f   :  { %v331_v18 = vadd.f32 %v330_v17, %v263_v16  ;;  %v835_v19 = vpop.f32.mrb[3].mxu0 }
 0x221   :  { %v334_v20 = vmax.f32 %v331_v18, 0.0 }
 0x223   :  { %869 = vmatmul.mubr.f32.vlgmr.msra.gmra.mrb[2].mxu1 %v334_v20 }
 0x224   :  { %938 = vmatprep.mubr.msk.f32.mxu1 %vm1198_vm0, %v1199_v1  ;;  %1063 = vmatpush3.bf16.msra.mxu1 %v1062_v27  ;;  %v526_v1 = vld [vmem:[#allocation5 + $0x2b0] sm:$0xff] }
 0x225   :  { %1064 = vmatprep.subr.bf16.mxu1 %v1197_v0  ;;  %v1071_v34 = vpack.c.bf16 %v527_v33, %v526_v1 }
 0x228   :  { %1066 = vmatpush3.bf16.msra.mxu1 %v1065_v29 }
 0x229   :  { %1067 = vmatprep.subr.bf16.mxu1 %v1197_v0 }
 0x22c   :  { %1069 = vmatpush3.bf16.msra.mxu1 %v1068_v32 }
 0x22d   :  { %1070 = vmatprep.subr.bf16.mxu1 %v1197_v0 }
 0x230   :  { %1072 = vmatpush3.bf16.msra.mxu1 %v1071_v34 }
 0x231   :  { %1073 = vmatprep.subr.bf16.mxu1 %v1197_v0 }
 0x234   :  { %1075 = vmatpush3.bf16.msra.mxu1 %v1074_v39 }
 0x235   :  { %1076 = vmatprep.subr.bf16.mxu1 %v1197_v0 }
 0x238   :  { %1078 = vmatpush3.bf16.msra.mxu1 %v1077_v42 }
 0x239   :  { %1079 = vmatprep.subr.bf16.mxu1 %v1197_v0 }
 0x23c   :  { %1081 = vmatpush3.bf16.msra.mxu1 %v1080_v45 }
 0x23d   :  { %1082 = vmatprep.subr.bf16.mxu1 %v1197_v0 }
 0x240   :  { %1084 = vmatpush3.bf16.msra.mxu1 %v1083_v54 }
 0x2f6   :  { %v422_v48 = vpop.f32.mrb[2].mxu1 }
 0x2f7   :  { %v423_v49 = vadd.f32 %v422_v48, %v355_v47  ;;  %v870_v50 = vpop.f32.mrb[3].mxu1 }
 0x2f9   :  { %v426_v51 = vmax.f32 %v423_v49, 0.0 }
 0x2fb   :  { %904 = vmatmul.mubr.f32.vlgmr.msra.gmra.mrb[4].mxu0 %v426_v51 }
 0x3ce   :  { %v514_v57 = vpop.f32.mrb[4].mxu0 }
 0x3cf   :  { %v515_v58 = vadd.f32 %v514_v57, %v447_v56  ;;  %v905_v0 = vpop.f32.mrb[5].mxu0 }
 0x3d1   :  { %v518_v59 = vmax.f32 %v515_v58, 0.0 }
 0x3d3   :  { %939 = vmatmul.mubr.f32.vlgmr.msra.gmra.mrb[4].mxu1 %v518_v59 }
 0x4a6   :  { %v606_v62 = vpop.f32.mrb[4].mxu1 }
 0x4a7   :  { %v607_v63 = vadd.f32 %v606_v62, %v539_v61  ;;  %v940_v2 = vpop.f32.mrb[5].mxu1 }
 0x4a9   :  { %v610_v3 = vmax.f32 %v607_v63, 0.0 }
 0x4ab   :  { %611 = vst [vmem:[#allocation8] sm:$0xff] %v610_v3 }
 0x4ac   :  { %1175 = shalt.err (!%p1172_p0)
}
 0x4ad   :  { %s1176_s25 = scalar_lea.hbm %s1348_s3, 128 }
 0x4ae   :  { %p1177_p1 = scmp.ne.s32.totalorder %s1348_s3, %s1176_s25  ;;  %p1180_p2 = scmp.lt.u32.totalorder %s1176_s25, %s1348_s3 }
 0x4b0   :  { %p1182_p3 = pnand %p1180_p2, %p1177_p1 }
 0x4b2   :  { %1185 = shalt.err (!%p1182_p3)
}
 0x4b3   :  { %621 = dma.vmem_to_hbm [thread:$0]  %s619_s21, 128, %s1348_s3, [#allocation4]  }
 0x4b4   :  { %1190 = dma.done.wait [#allocation4], 128  }
 0x4b5   :  { %1191 = vsyncadd [#allocation4], 4294967168 }
 0x4b6   :  { %625 = vsyncpa [#allocation3], 1 }
 0x4b7   :  { %626 = vsyncpa [#allocation6], 1 }
 0x4b8   :  { %627 = vsyncpa [#allocation4], 1 }

</bundles_post_ra>
